<compile_context>
chip_gen: v5e
topology: v5e:2x2
jax: 0.10.0
libtpu: 0.0.40
codegen_flags: <defaults>
</compile_context>

<pallas_src>
import math

import jax
import jax.numpy as jnp
from jax.experimental import pallas as pl
from jax.experimental.pallas import tpu as pltpu

NEG_BIG = -9e15  # same constant as the PyTorch module


# ----------------------------------------------------------------------------
# Kernel
# ----------------------------------------------------------------------------
def _make_gat_kernel(alpha, bt, n, tk, f_out, concat):
    """Kernel closure with static sizes / LeakyReLU slope baked in."""
    alpha = float(alpha)
    n_k = n // tk  # number of neighbour tiles (static)

    def kernel(x_ref, adj_ref, w_ref, a1_ref, a2_ref, out_ref,
               h_ref, f1_ref, m_ref, l_ref, acc_ref):
        k = pl.program_id(1)

        # ---- init (once per batch-tile): h = x @ W, f1 = h . a1, reset stats
        @pl.when(k == 0)
        def _init():
            x = x_ref[...]                                   # (bt, n, f_in) f32
            w = w_ref[...]                                   # (f_in, f_out)
            w_b = jnp.broadcast_to(w[None], (bt,) + w.shape)
            h = jnp.einsum("bnf,bfo->bno", x, w_b,
                           preferred_element_type=jnp.float32)   # (bt, n, f_out)
            h_ref[...] = h
            # f1[b, i] = sum_o h[b, i, o] * a1[o]  (VPU mul + lane reduce)
            f1_ref[...] = jnp.sum(h * a1_ref[...], axis=-1, keepdims=True)
            m_ref[...] = jnp.full_like(m_ref, -jnp.inf)
            l_ref[...] = jnp.zeros_like(l_ref)
            acc_ref[...] = jnp.zeros_like(acc_ref)

        # ---- neighbour tile of h, sliced from the resident scratch copy
        if n_k == 1:
            h_k = h_ref[...]                                 # (bt, tk==n, f_out)
        else:
            start = pl.multiple_of(k * tk, tk)
            h_k = h_ref[:, pl.ds(start, tk), :]              # (bt, tk, f_out)

        # f2[b, 1, j] = sum_o h_k[b, j, o] * a2[o]  (lane-oriented over keys)
        a2_b = jnp.broadcast_to(a2_ref[...][None], (bt, 1, f_out))
        f2 = jnp.einsum("bio,bjo->bij", a2_b, h_k,
                        preferred_element_type=jnp.float32)  # (bt, 1, tk)

        # attention logits + LeakyReLU + adjacency mask
        e = f1_ref[...] + f2                                 # (bt, n, tk)
        e = jnp.where(e > 0, e, alpha * e)
        mask = adj_ref[...] != 0                             # int8 adjacency tile
        s = jnp.where(mask, e, jnp.float32(NEG_BIG))

        # ---- online softmax; normalisation deferred to the epilogue
        m_prev = m_ref[...]
        m_new = jnp.maximum(m_prev, jnp.max(s, axis=-1, keepdims=True))
        corr = jnp.exp(m_prev - m_new)                       # (bt, n, 1)
        p = jnp.exp(s - m_new)                               # (bt, n, tk)
        l_ref[...] = corr * l_ref[...] + jnp.sum(p, axis=-1, keepdims=True)
        pv = jnp.einsum("bij,bjo->bio",
                        p.astype(jnp.bfloat16), h_k.astype(jnp.bfloat16),
                        preferred_element_type=jnp.float32)  # (bt, n, f_out)
        acc_ref[...] = corr * acc_ref[...] + pv
        m_ref[...] = m_new

        # ---- finalise on the last neighbour tile
        @pl.when(k == n_k - 1)
        def _finalize():
            inv_l = pl.reciprocal(l_ref[...], approx=True)   # EUP, ~free
            h_prime = acc_ref[...] * inv_l
            if concat:
                # ELU (alpha=1); clamp before exp so the dead branch stays finite
                neg = jnp.exp(jnp.minimum(h_prime, 0.0)) - 1.0
                res = jnp.where(h_prime > 0, h_prime, neg)
            else:
                res = h_prime
            out_ref[...] = res.astype(out_ref.dtype)

    return kernel


# ----------------------------------------------------------------------------
# Tiling heuristics (sized against a conservative 16 MiB VMEM budget so the
# same tiling fits v5e (16 MiB scoped default), v6e and v7x (64 MiB physical)).
# ----------------------------------------------------------------------------
def _pad(x, m):
    return ((x + m - 1) // m) * m


def _vmem_estimate(bt, n, tk, f_in, f_out):
    f32 = 4
    x_b = 2 * bt * _pad(n, 8) * _pad(f_in, 128) * f32        # double-buffered
    adj_b = 2 * bt * _pad(n, 32) * _pad(tk, 128) * 1         # int8
    w_b = 2 * _pad(f_in, 8) * _pad(f_out, 128) * f32
    a_b = 2 * 2 * 8 * 128 * f32
    out_b = 2 * bt * _pad(n, 8) * _pad(f_out, 128) * f32
    scr = bt * _pad(n, 8) * (2 * _pad(f_out, 128) + 3 * 128) * f32
    return x_b + adj_b + w_b + a_b + out_b + scr


def _pick_tk(n, max_tk=512):
    if n <= max_tk:
        return n
    for tk in range(max_tk, 127, -128):
        if n % tk == 0:
            return tk
    return n  # fallback: whole neighbour row per step


def _pick_bt(b, n, tk, f_in, f_out, budget=16 << 20):
    # small per-batch work -> maximise batch tile (amortise per-step overhead);
    # large per-batch work -> keep >=2 parallel batch-tiles (v7x megacore).
    small_work = n * n <= 128 * 128
    best = 1
    for cand in range(1, b + 1):
        if b % cand:
            continue
        if (not small_work) and b >= 2 and b // cand < 2:
            continue
        if _vmem_estimate(cand, n, tk, f_in, f_out) <= budget:
            best = cand
    return best


# ----------------------------------------------------------------------------
# Wrapper
# ----------------------------------------------------------------------------
def gat_forward(x, adj, W, a, alpha=0.2, concat=True):
    """Pallas GAT forward.  x: (B, N, F_in), adj: (B, N, N) (float/bool/int8),
    W: (F_in, F_out), a: (2*F_out, 1).  Returns (B, N, F_out)."""
    B, N, F_in = x.shape
    F_out = W.shape[1]
    a1 = a[:F_out, 0].reshape(1, F_out)
    a2 = a[F_out:, 0].reshape(1, F_out)

    # Adjacency as int8 mask: 4x less HBM traffic than f32 on the N^2 stream.
    # (Callers holding the adjacency as int8/bool already skip this conversion.)
    if adj.dtype == jnp.int8:
        adj_i8 = adj
    elif adj.dtype == jnp.bool_:
        adj_i8 = adj.astype(jnp.int8)
    else:
        adj_i8 = (adj > 0).astype(jnp.int8)

    tk = _pick_tk(N)
    bt = _pick_bt(B, N, tk, F_in, F_out)
    n_k = N // tk

    kernel = _make_gat_kernel(alpha, bt, N, tk, F_out, concat)

    return pl.pallas_call(
        kernel,
        out_shape=jax.ShapeDtypeStruct((B, N, F_out), x.dtype),
        grid_spec=pltpu.PrefetchScalarGridSpec(
            num_scalar_prefetch=0,
            grid=(B // bt, n_k),
            in_specs=[
                pl.BlockSpec((bt, N, F_in), lambda b, k: (b, 0, 0)),   # x
                pl.BlockSpec((bt, N, tk), lambda b, k: (b, 0, k)),     # adj (int8)
                pl.BlockSpec((F_in, F_out), lambda b, k: (0, 0)),      # W
                pl.BlockSpec((1, F_out), lambda b, k: (0, 0)),         # a1 row
                pl.BlockSpec((1, F_out), lambda b, k: (0, 0)),         # a2 row
            ],
            out_specs=pl.BlockSpec((bt, N, F_out), lambda b, k: (b, 0, 0)),
            scratch_shapes=[
                pltpu.VMEM((bt, N, F_out), jnp.float32),  # h (resident per batch tile)
                pltpu.VMEM((bt, N, 1), jnp.float32),      # f1
                pltpu.VMEM((bt, N, 1), jnp.float32),      # running max m
                pltpu.VMEM((bt, N, 1), jnp.float32),      # running sum l
                pltpu.VMEM((bt, N, F_out), jnp.float32),  # un-normalised accumulator
            ],
        ),
        compiler_params=pltpu.CompilerParams(
            dimension_semantics=("parallel", "arbitrary"),
            vmem_limit_bytes=32 * 1024 * 1024,
        ),
    )(x, adj_i8, W, a1, a2)


# ----------------------------------------------------------------------------
# Reference + test
# ----------------------------------------------------------------------------
def _xavier_uniform(key, shape, gain):
    fan_in, fan_out = shape[0], shape[1]
    bound = gain * math.sqrt(6.0 / (fan_in + fan_out))
    return jax.random.uniform(key, shape, jnp.float32, -bound, bound)


def _reference(x, adj, W, a, alpha):
    """Pure-JAX reference mirroring the PyTorch forward (f32 end to end)."""
    h = jnp.einsum("bnf,fo->bno", x, W)
    F_out = W.shape[1]
    f1 = jnp.einsum("bno,o->bn", h, a[:F_out, 0])
    f2 = jnp.einsum("bno,o->bn", h, a[F_out:, 0])
    e = f1[:, :, None] + f2[:, None, :]
    e = jnp.where(e > 0, e, alpha * e)
    att = jnp.where(adj > 0, e, NEG_BIG)
    att = jax.nn.softmax(att, axis=2)
    h_prime = jnp.einsum("bnm,bmo->bno", att, h)
    return jnp.where(h_prime > 0, h_prime, jnp.exp(jnp.minimum(h_prime, 0.0)) - 1.0)


if __name__ == "__main__":
    # Small, module-consistent shapes.
    B, N = 2, 16
    in_features, out_features = 8, 8
    alpha = 0.2

    key = jax.random.PRNGKey(0)
    k_w, k_a, k_x, k_adj = jax.random.split(key, 4)

    # Deterministic parameter init (xavier_uniform, gain=1.414), as in __init__.
    W = _xavier_uniform(k_w, (in_features, out_features), gain=1.414)
    a = _xavier_uniform(k_a, (2 * out_features, 1), gain=1.414)

    x = jax.random.normal(k_x, (B, N, in_features), jnp.float32)
    adj = (jax.random.uniform(k_adj, (B, N, N)) > 0.5).astype(jnp.float32)
    # make sure every node has at least one neighbor (self-loop)
    adj = jnp.maximum(adj, jnp.eye(N, dtype=jnp.float32)[None, :, :])

    out = gat_forward(x, adj, W, a, alpha=alpha)
    out = jax.block_until_ready(out)

    ref = _reference(x, adj, W, a, alpha)
    assert out.shape == (B, N, out_features)
    # tolerance loosened vs. pure-f32 because att@h runs in bf16 (f32 accumulation)
    assert jnp.allclose(out, ref, atol=2e-2, rtol=2e-2), "mismatch vs reference"

    print("KERNEL_OK")
</pallas_src>

<mosaic_0001>
module attributes {stable_mosaic.version = 11 : i64} {
  func.func @kernel(%arg0: i32, %arg1: i32, %arg2: memref<2x16x8xf32, #tpu.memory_space<vmem>>, %arg3: memref<2x16x16xi8, #tpu.memory_space<vmem>>, %arg4: memref<8x8xf32, #tpu.memory_space<vmem>>, %arg5: memref<1x8xf32, #tpu.memory_space<vmem>>, %arg6: memref<1x8xf32, #tpu.memory_space<vmem>>, %arg7: memref<2x16x8xf32, #tpu.memory_space<vmem>>, %arg8: memref<2x16x8xf32, #tpu.memory_space<vmem>>, %arg9: memref<2x16x1xf32, #tpu.memory_space<vmem>>, %arg10: memref<2x16x1xf32, #tpu.memory_space<vmem>>, %arg11: memref<2x16x1xf32, #tpu.memory_space<vmem>>, %arg12: memref<2x16x8xf32, #tpu.memory_space<vmem>>) attributes {dimension_semantics = [#tpu.dimension_semantics<parallel>, #tpu.dimension_semantics<arbitrary>], iteration_bounds = array<i64: 1, 1>, scalar_prefetch = 0 : i64, scratch_operands = 5 : i64, tpu.core_type = #tpu.core_type<tc>, window_params = [{transform_indices = @transform_0, window_bounds = array<i64: 2, 16, 8>}, {transform_indices = @transform_1, window_bounds = array<i64: 2, 16, 16>}, {pipeline_mode = #tpu.pipeline_mode<synchronous>, transform_indices = @transform_2, window_bounds = array<i64: 8, 8>}, {pipeline_mode = #tpu.pipeline_mode<synchronous>, transform_indices = @transform_3, window_bounds = array<i64: 1, 8>}, {pipeline_mode = #tpu.pipeline_mode<synchronous>, transform_indices = @transform_4, window_bounds = array<i64: 1, 8>}, {transform_indices = @transform_5, window_bounds = array<i64: 2, 16, 8>}]} {
    %c0_i32 = arith.constant 0 : i32
    %0 = arith.cmpi eq, %arg1, %c0_i32 : i32
    %1 = arith.extui %0 : i1 to i32
    %c0_i32_0 = arith.constant 0 : i32
    %2 = arith.cmpi ne, %1, %c0_i32_0 : i32
    scf.if %2 {
      %c0_37 = arith.constant 0 : index
      %c0_38 = arith.constant 0 : index
      %c0_39 = arith.constant 0 : index
      %50 = vector.load %arg2[%c0_37, %c0_38, %c0_39] : memref<2x16x8xf32, #tpu.memory_space<vmem>>, vector<2x16x8xf32>
      %c0_40 = arith.constant 0 : index
      %c0_41 = arith.constant 0 : index
      %51 = vector.load %arg4[%c0_40, %c0_41] : memref<8x8xf32, #tpu.memory_space<vmem>>, vector<8x8xf32>
      %52 = vector.shape_cast %51 : vector<8x8xf32> to vector<1x8x8xf32>
      %53 = vector.shape_cast %52 : vector<1x8x8xf32> to vector<1x8x8xf32>
      %54 = vector.broadcast %53 : vector<1x8x8xf32> to vector<2x8x8xf32>
      "tpu.trace_start"() <{level = 10 : i32, message = "bnf,bfo->bno"}> : () -> ()
      %cst_42 = arith.constant dense<0.000000e+00> : vector<2x16x8xf32>
      %55 = tpu.matmul %50, %54, %cst_42 {dimension_numbers = #tpu.dot_dimension_numbers<[2], [1], [1], [2], [0, 0, 0, 1, 1, 2], [0], [0]>} : vector<2x16x8xf32>, vector<2x8x8xf32>, vector<2x16x8xf32> -> vector<2x16x8xf32>
      "tpu.trace_stop"() : () -> ()
      %c0_43 = arith.constant 0 : index
      %c0_44 = arith.constant 0 : index
      %c0_45 = arith.constant 0 : index
      %56 = vector.load %arg8[%c0_43, %c0_44, %c0_45] : memref<2x16x8xf32, #tpu.memory_space<vmem>>, vector<2x16x8xf32>
      tpu.vector_store %arg8[%c0_43, %c0_44, %c0_45], %55 {strides = array<i32>} : memref<2x16x8xf32, #tpu.memory_space<vmem>>, vector<2x16x8xf32>,
      %c0_46 = arith.constant 0 : index
      %c0_47 = arith.constant 0 : index
      %57 = vector.load %arg5[%c0_46, %c0_47] : memref<1x8xf32, #tpu.memory_space<vmem>>, vector<1x8xf32>
      %58 = vector.shape_cast %57 : vector<1x8xf32> to vector<1x1x8xf32>
      %59 = vector.broadcast %58 : vector<1x1x8xf32> to vector<2x16x8xf32>
      %60 = arith.mulf %55, %59 : vector<2x16x8xf32>
      %cst_48 = arith.constant dense<0.000000e+00> : vector<2x16xf32>
      %61 = vector.multi_reduction <add>, %60, %cst_48 [2] : vector<2x16x8xf32> to vector<2x16xf32>
      %62 = vector.shape_cast %61 : vector<2x16xf32> to vector<2x16x1xf32>
      %c0_49 = arith.constant 0 : index
      %c0_50 = arith.constant 0 : index
      %c0_51 = arith.constant 0 : index
      %63 = vector.load %arg9[%c0_49, %c0_50, %c0_51] : memref<2x16x1xf32, #tpu.memory_space<vmem>>, vector<2x16x1xf32>
      tpu.vector_store %arg9[%c0_49, %c0_50, %c0_51], %62 {strides = array<i32>} : memref<2x16x1xf32, #tpu.memory_space<vmem>>, vector<2x16x1xf32>,
      %cst_52 = arith.constant 0xFF800000 : f32
      %64 = vector.broadcast %cst_52 : f32 to vector<2x16x1xf32>
      %c0_53 = arith.constant 0 : index
      %c0_54 = arith.constant 0 : index
      %c0_55 = arith.constant 0 : index
      %65 = vector.load %arg10[%c0_53, %c0_54, %c0_55] : memref<2x16x1xf32, #tpu.memory_space<vmem>>, vector<2x16x1xf32>
      tpu.vector_store %arg10[%c0_53, %c0_54, %c0_55], %64 {strides = array<i32>} : memref<2x16x1xf32, #tpu.memory_space<vmem>>, vector<2x16x1xf32>,
      %cst_56 = arith.constant 0.000000e+00 : f32
      %66 = vector.broadcast %cst_56 : f32 to vector<2x16x1xf32>
      %c0_57 = arith.constant 0 : index
      %c0_58 = arith.constant 0 : index
      %c0_59 = arith.constant 0 : index
      %67 = vector.load %arg11[%c0_57, %c0_58, %c0_59] : memref<2x16x1xf32, #tpu.memory_space<vmem>>, vector<2x16x1xf32>
      tpu.vector_store %arg11[%c0_57, %c0_58, %c0_59], %66 {strides = array<i32>} : memref<2x16x1xf32, #tpu.memory_space<vmem>>, vector<2x16x1xf32>,
      %cst_60 = arith.constant 0.000000e+00 : f32
      %68 = vector.broadcast %cst_60 : f32 to vector<2x16x8xf32>
      %c0_61 = arith.constant 0 : index
      %c0_62 = arith.constant 0 : index
      %c0_63 = arith.constant 0 : index
      %69 = vector.load %arg12[%c0_61, %c0_62, %c0_63] : memref<2x16x8xf32, #tpu.memory_space<vmem>>, vector<2x16x8xf32>
      tpu.vector_store %arg12[%c0_61, %c0_62, %c0_63], %68 {strides = array<i32>} : memref<2x16x8xf32, #tpu.memory_space<vmem>>, vector<2x16x8xf32>,
    } else {
    }
    %c0 = arith.constant 0 : index
    %c0_1 = arith.constant 0 : index
    %c0_2 = arith.constant 0 : index
    %3 = vector.load %arg8[%c0, %c0_1, %c0_2] : memref<2x16x8xf32, #tpu.memory_space<vmem>>, vector<2x16x8xf32>
    %c0_3 = arith.constant 0 : index
    %c0_4 = arith.constant 0 : index
    %4 = vector.load %arg6[%c0_3, %c0_4] : memref<1x8xf32, #tpu.memory_space<vmem>>, vector<1x8xf32>
    %5 = vector.shape_cast %4 : vector<1x8xf32> to vector<1x1x8xf32>
    %6 = vector.shape_cast %5 : vector<1x1x8xf32> to vector<1x1x8xf32>
    %7 = vector.broadcast %6 : vector<1x1x8xf32> to vector<2x1x8xf32>
    "tpu.trace_start"() <{level = 10 : i32, message = "bio,bjo->bij"}> : () -> ()
    %cst = arith.constant dense<0.000000e+00> : vector<2x1x16xf32>
    %8 = tpu.matmul %7, %3, %cst {dimension_numbers = #tpu.dot_dimension_numbers<[2], [2], [1], [1], [0, 0, 0, 1, 1, 1], [0], [0]>} : vector<2x1x8xf32>, vector<2x16x8xf32>, vector<2x1x16xf32> -> vector<2x1x16xf32>
    "tpu.trace_stop"() : () -> ()
    %c0_5 = arith.constant 0 : index
    %c0_6 = arith.constant 0 : index
    %c0_7 = arith.constant 0 : index
    %9 = vector.load %arg9[%c0_5, %c0_6, %c0_7] : memref<2x16x1xf32, #tpu.memory_space<vmem>>, vector<2x16x1xf32>
    %10 = vector.broadcast %9 : vector<2x16x1xf32> to vector<2x16x16xf32>
    %11 = vector.broadcast %8 : vector<2x1x16xf32> to vector<2x16x16xf32>
    %12 = arith.addf %10, %11 : vector<2x16x16xf32>
    %cst_8 = arith.constant 0.000000e+00 : f32
    %13 = vector.broadcast %cst_8 : f32 to vector<2x16x16xf32>
    %14 = arith.cmpf ogt, %12, %13 : vector<2x16x16xf32>
    %cst_9 = arith.constant 2.000000e-01 : f32
    %15 = vector.broadcast %cst_9 : f32 to vector<2x16x16xf32>
    %16 = arith.mulf %15, %12 : vector<2x16x16xf32>
    %17 = arith.select %14, %12, %16 : vector<2x16x16xi1>, vector<2x16x16xf32>
    %c0_10 = arith.constant 0 : index
    %c0_11 = arith.constant 0 : index
    %c0_12 = arith.constant 0 : index
    %18 = vector.load %arg3[%c0_10, %c0_11, %c0_12] : memref<2x16x16xi8, #tpu.memory_space<vmem>>, vector<2x16x16xi8>
    %c0_i8 = arith.constant 0 : i8
    %19 = vector.broadcast %c0_i8 : i8 to vector<2x16x16xi8>
    %20 = arith.cmpi ne, %18, %19 : vector<2x16x16xi8>
    %cst_13 = arith.constant -9.000000e+15 : f32
    %21 = vector.broadcast %cst_13 : f32 to vector<2x16x16xf32>
    %22 = arith.select %20, %17, %21 : vector<2x16x16xi1>, vector<2x16x16xf32>
    %c0_14 = arith.constant 0 : index
    %c0_15 = arith.constant 0 : index
    %c0_16 = arith.constant 0 : index
    %23 = vector.load %arg10[%c0_14, %c0_15, %c0_16] : memref<2x16x1xf32, #tpu.memory_space<vmem>>, vector<2x16x1xf32>
    %cst_17 = arith.constant dense<0xFF800000> : vector<2x16xf32>
    %24 = vector.multi_reduction <maximumf>, %22, %cst_17 [2] : vector<2x16x16xf32> to vector<2x16xf32>
    %25 = vector.shape_cast %24 : vector<2x16xf32> to vector<2x16x1xf32>
    %26 = arith.maximumf %23, %25 : vector<2x16x1xf32>
    %27 = arith.subf %23, %26 : vector<2x16x1xf32>
    %28 = math.exp %27 : vector<2x16x1xf32>
    %29 = vector.broadcast %26 : vector<2x16x1xf32> to vector<2x16x16xf32>
    %30 = arith.subf %22, %29 : vector<2x16x16xf32>
    %31 = math.exp %30 : vector<2x16x16xf32>
    %c0_18 = arith.constant 0 : index
    %c0_19 = arith.constant 0 : index
    %c0_20 = arith.constant 0 : index
    %32 = vector.load %arg11[%c0_18, %c0_19, %c0_20] : memref<2x16x1xf32, #tpu.memory_space<vmem>>, vector<2x16x1xf32>
    %33 = arith.mulf %28, %32 : vector<2x16x1xf32>
    %cst_21 = arith.constant dense<0.000000e+00> : vector<2x16xf32>
    %34 = vector.multi_reduction <add>, %31, %cst_21 [2] : vector<2x16x16xf32> to vector<2x16xf32>
    %35 = vector.shape_cast %34 : vector<2x16xf32> to vector<2x16x1xf32>
    %36 = arith.addf %33, %35 : vector<2x16x1xf32>
    %c0_22 = arith.constant 0 : index
    %c0_23 = arith.constant 0 : index
    %c0_24 = arith.constant 0 : index
    %37 = vector.load %arg11[%c0_22, %c0_23, %c0_24] : memref<2x16x1xf32, #tpu.memory_space<vmem>>, vector<2x16x1xf32>
    tpu.vector_store %arg11[%c0_22, %c0_23, %c0_24], %36 {strides = array<i32>} : memref<2x16x1xf32, #tpu.memory_space<vmem>>, vector<2x16x1xf32>,
    %38 = arith.truncf %31 : vector<2x16x16xf32> to vector<2x16x16xbf16>
    %39 = arith.truncf %3 : vector<2x16x8xf32> to vector<2x16x8xbf16>
    "tpu.trace_start"() <{level = 10 : i32, message = "bij,bjo->bio"}> : () -> ()
    %cst_25 = arith.constant dense<0.000000e+00> : vector<2x16x8xf32>
    %40 = tpu.matmul %38, %39, %cst_25 {dimension_numbers = #tpu.dot_dimension_numbers<[2], [1], [1], [2], [0, 0, 0, 1, 1, 2], [0], [0]>} : vector<2x16x16xbf16>, vector<2x16x8xbf16>, vector<2x16x8xf32> -> vector<2x16x8xf32>
    "tpu.trace_stop"() : () -> ()
    %c0_26 = arith.constant 0 : index
    %c0_27 = arith.constant 0 : index
    %c0_28 = arith.constant 0 : index
    %41 = vector.load %arg12[%c0_26, %c0_27, %c0_28] : memref<2x16x8xf32, #tpu.memory_space<vmem>>, vector<2x16x8xf32>
    %42 = vector.broadcast %28 : vector<2x16x1xf32> to vector<2x16x8xf32>
    %43 = arith.mulf %42, %41 : vector<2x16x8xf32>
    %44 = arith.addf %43, %40 : vector<2x16x8xf32>
    %c0_29 = arith.constant 0 : index
    %c0_30 = arith.constant 0 : index
    %c0_31 = arith.constant 0 : index
    %45 = vector.load %arg12[%c0_29, %c0_30, %c0_31] : memref<2x16x8xf32, #tpu.memory_space<vmem>>, vector<2x16x8xf32>
    tpu.vector_store %arg12[%c0_29, %c0_30, %c0_31], %44 {strides = array<i32>} : memref<2x16x8xf32, #tpu.memory_space<vmem>>, vector<2x16x8xf32>,
    %c0_32 = arith.constant 0 : index
    %c0_33 = arith.constant 0 : index
    %c0_34 = arith.constant 0 : index
    %46 = vector.load %arg10[%c0_32, %c0_33, %c0_34] : memref<2x16x1xf32, #tpu.memory_space<vmem>>, vector<2x16x1xf32>
    tpu.vector_store %arg10[%c0_32, %c0_33, %c0_34], %26 {strides = array<i32>} : memref<2x16x1xf32, #tpu.memory_space<vmem>>, vector<2x16x1xf32>,
    %c0_i32_35 = arith.constant 0 : i32
    %47 = arith.cmpi eq, %arg1, %c0_i32_35 : i32
    %48 = arith.extui %47 : i1 to i32
    %c0_i32_36 = arith.constant 0 : i32
    %49 = arith.cmpi ne, %48, %c0_i32_36 : i32
    scf.if %49 {
      %c0_37 = arith.constant 0 : index
      %c0_38 = arith.constant 0 : index
      %c0_39 = arith.constant 0 : index
      %50 = vector.load %arg11[%c0_37, %c0_38, %c0_39] : memref<2x16x1xf32, #tpu.memory_space<vmem>>, vector<2x16x1xf32>
      %51 = tpu.reciprocal %50 {approx = true} : vector<2x16x1xf32> -> vector<2x16x1xf32>
      %c0_40 = arith.constant 0 : index
      %c0_41 = arith.constant 0 : index
      %c0_42 = arith.constant 0 : index
      %52 = vector.load %arg12[%c0_40, %c0_41, %c0_42] : memref<2x16x8xf32, #tpu.memory_space<vmem>>, vector<2x16x8xf32>
      %53 = vector.broadcast %51 : vector<2x16x1xf32> to vector<2x16x8xf32>
      %54 = arith.mulf %52, %53 : vector<2x16x8xf32>
      %cst_43 = arith.constant 0.000000e+00 : f32
      %55 = vector.broadcast %cst_43 : f32 to vector<2x16x8xf32>
      %56 = arith.minimumf %54, %55 : vector<2x16x8xf32>
      %57 = math.exp %56 : vector<2x16x8xf32>
      %cst_44 = arith.constant 1.000000e+00 : f32
      %58 = vector.broadcast %cst_44 : f32 to vector<2x16x8xf32>
      %59 = arith.subf %57, %58 : vector<2x16x8xf32>
      %cst_45 = arith.constant 0.000000e+00 : f32
      %60 = vector.broadcast %cst_45 : f32 to vector<2x16x8xf32>
      %61 = arith.cmpf ogt, %54, %60 : vector<2x16x8xf32>
      %62 = arith.select %61, %54, %59 : vector<2x16x8xi1>, vector<2x16x8xf32>
      %c0_46 = arith.constant 0 : index
      %c0_47 = arith.constant 0 : index
      %c0_48 = arith.constant 0 : index
      %63 = vector.load %arg7[%c0_46, %c0_47, %c0_48] : memref<2x16x8xf32, #tpu.memory_space<vmem>>, vector<2x16x8xf32>
      tpu.vector_store %arg7[%c0_46, %c0_47, %c0_48], %62 {strides = array<i32>} : memref<2x16x8xf32, #tpu.memory_space<vmem>>, vector<2x16x8xf32>,
    } else {
    }
    return
  }
  func.func @transform_0(%arg0: i32, %arg1: i32) -> (i32, i32, i32) {
    %c0_i32 = arith.constant 0 : i32
    %c0_i32_0 = arith.constant 0 : i32
    %c0_i32_1 = arith.constant 0 : i32
    return %arg0, %c0_i32, %c0_i32_0 : i32, i32, i32
  }
  func.func @transform_1(%arg0: i32, %arg1: i32) -> (i32, i32, i32) {
    %c0_i32 = arith.constant 0 : i32
    %c0_i32_0 = arith.constant 0 : i32
    return %arg0, %c0_i32, %arg1 : i32, i32, i32
  }
  func.func @transform_2(%arg0: i32, %arg1: i32) -> (i32, i32) {
    %c0_i32 = arith.constant 0 : i32
    %c0_i32_0 = arith.constant 0 : i32
    %c0_i32_1 = arith.constant 0 : i32
    return %c0_i32, %c0_i32_0 : i32, i32
  }
  func.func @transform_3(%arg0: i32, %arg1: i32) -> (i32, i32) {
    %c0_i32 = arith.constant 0 : i32
    %c0_i32_0 = arith.constant 0 : i32
    %c0_i32_1 = arith.constant 0 : i32
    return %c0_i32, %c0_i32_0 : i32, i32
  }
  func.func @transform_4(%arg0: i32, %arg1: i32) -> (i32, i32) {
    %c0_i32 = arith.constant 0 : i32
    %c0_i32_0 = arith.constant 0 : i32
    %c0_i32_1 = arith.constant 0 : i32
    return %c0_i32, %c0_i32_0 : i32, i32
  }
  func.func @transform_5(%arg0: i32, %arg1: i32) -> (i32, i32, i32) {
    %c0_i32 = arith.constant 0 : i32
    %c0_i32_0 = arith.constant 0 : i32
    %c0_i32_1 = arith.constant 0 : i32
    return %arg0, %c0_i32, %c0_i32_0 : i32, i32, i32
  }
}

</mosaic_0001>

<bundles_post_ra>
// kernel: tpu_custom_call.1
= control target key start
LH: loop header
LB: loop body
LE: loop exit
PB: predicated region body
PF: predicated region fallthrough
CT: control target
= control target key end

     0   :  { %vm32_vm0 = vcmask 64512   ;;  %v583_v33 = vmov 0   ;;  %vm115_vm1 = vcmask 7168   ;;  %vm263_vm6 = vcmask 130048   ;;  %s736_s2 = inlined_call_operand.vmem [shape: f32[8,8], index: 2, kind: input, shape index: {}]   ;;  %s737_s0 = inlined_call_operand.vmem [shape: f32[2,16,8], index: 0, kind: input, shape index: {}]   ;;  %s738_s3 = inlined_call_operand.vmem [shape: f32[1,8], index: 3, kind: input, shape index: {}]   ;;  %s739_s4 = inlined_call_operand.vmem [shape: f32[1,8], index: 4, kind: input, shape index: {}]   ;;  %s740_s1 = inlined_call_operand.vmem [shape: s8[2,16,16], index: 1, kind: input, shape index: {}]   ;;  %s741_s5 = inlined_call_operand.vmem [shape: f32[2,16,8], index: 5, kind: output, shape index: {}]  }
   0x1   :  { %v31_v0 = vld [vmem:[%s736_s2] sm:$0xff]  ;;  %v29_v2 = vld [vmem:[%s737_s0 + $0x10] sm:$0xff]  ;;  %v28_v3 = vld [vmem:[%s737_s0 + $0x8] sm:$0xff]  ;;  %548 = vset.pattern.permute.xlu0 %v583_v33  ;;  %547 = vset.pattern.permute.xlu2 %v583_v33  ;;  %v584_v57 = vmov -inf  }
   0x2   :  { %v27_v1 = vld [vmem:[%s737_s0] sm:$0xff]  ;;  %54 = vmatpush.msra.mxu0 %v31_v0  ;;  %83 = vmatpush.msra.mxu1 %v31_v0  ;;  %v30_v4 = vld [vmem:[%s737_s0 + $0x18] sm:$0xff]  ;;  %120 = vst.msk [vmem:[#allocation4] sm:$0xff] %vm115_vm1, %v584_v57 }
   0x3   :  { %528 = vmatmul.msk.f32.vlgmr.msra.gmra.mxu0 %vm32_vm0, %v27_v1  ;;  %530 = vmatmul.msk.f32.vlgmr.msra.gmra.mxu1 %vm32_vm0, %v29_v2  ;;  %v550_v5 = vld [vmem:[%s738_s3] ss:$0 sm:$0xff]  ;;  %v236_v46 = vld [vmem:[%s740_s1 + $0x2] sm:$0x3]  ;;  %121 = vst.msk [vmem:[#allocation4 + $0x8] sm:$0xff] %vm115_vm1, %v584_v57 }
   0x4   :  { %v136_v31 = vld [vmem:[%s739_s4] sm:$0x1]  ;;  %549 = vset.pattern.permute.xlu1 %v583_v33  ;;  %vm240_vm3 = vnez %v236_v46  ;;  %122 = vst.msk [vmem:[#allocation4 + $0x10] sm:$0xff] %vm115_vm1, %v584_v57  ;;  %v237_v61 = vld [vmem:[%s740_s1 + $0x4] sm:$0x3] }
   0x5   :  { %v235_v42 = vld [vmem:[%s740_s1] sm:$0x3]  ;;  %v244_v51 = vsel %vm240_vm3, 16843009, %v583_v33  ;;  %123 = vst.msk [vmem:[#allocation4 + $0x18] sm:$0xff] %vm115_vm1, %v584_v57  ;;  %vm241_vm9 = vnez %v237_v61 }
   0x6   :  { %vm239_vm2 = vnez %v235_v42  ;;  %v248_v55 = vunpack.c.0.s8 %v244_v51  ;;  %v245_v1 = vsel %vm241_vm9, 16843009, %v583_v33 }
   0x7   :  { %v243_v44 = vsel %vm239_vm2, 16843009, %v583_v33 }
   0x8   :  { %v247_v47 = vunpack.c.0.s8 %v243_v44  ;;  %vm252_vm8 = vcmp.ne.s32.totalorder %v248_v55, 0 }
   0xa   :  { %vm251_vm5 = vcmp.ne.s32.totalorder %v247_v47, 0 }
   0xb   :  { %529 = vmatmul.msk.f32.gmra.mxu0 %vm32_vm0, %v28_v3  ;;  %531 = vmatmul.msk.f32.gmra.mxu1 %vm32_vm0, %v30_v4  ;;  %v238_v3 = vld [vmem:[%s740_s1 + $0x6] sm:$0x3]  ;;  %v249_v4 = vunpack.c.0.s8 %v245_v1 }
   0xc   :  { %vm242_vm10 = vnez %v238_v3 }
   0xd   :  { %vm253_vm12 = vcmp.ne.s32.totalorder %v249_v4, 0 }
  0x80   :  { %v56_v6 = vpop.f32.mrf.mxu0  ;;  %v85_v7 = vpop.f32.mrf.mxu1 }
  0x81   :  { %91 = vst.msk [vmem:[#allocation2] sm:$0xff] %vm32_vm0, %v56_v6  ;;  %v101_v8 = vmul.f32 %v550_v5, %v85_v7  ;;  %v99_v9 = vmul.f32 %v550_v5, %v56_v6 }
  0x82   :  { %93 = vst.msk [vmem:[#allocation2 + $0x10] sm:$0xff] %vm32_vm0, %v85_v7 }
  0x83   :  { %v109_v10 = vsel %vm32_vm0, %v101_v8, 0.0  ;;  %v103_v11 = vsel %vm32_vm0, %v99_v9, 0.0  ;;  %v246_v8 = vsel %vm242_vm10, 16843009, %v583_v33 }
  0x84   :  { %110 = vadd.xlane.f32.xlu1 %v109_v10  ;;  %104 = vadd.xlane.f32.xlu0 %v103_v11 }
  0x88   :  { %v59_v12 = vpop.f32.mrf.mxu0  ;;  %v88_v13 = vpop.f32.mrf.mxu1  ;;  %v132_v18 = vld [vmem:[#allocation2] sm:$0xff] }
  0x89   :  { %92 = vst.msk [vmem:[#allocation2 + $0x8] sm:$0xff] %vm32_vm0, %v59_v12  ;;  %v100_v14 = vmul.f32 %v550_v5, %v59_v12  ;;  %v102_v15 = vmul.f32 %v550_v5, %v88_v13  ;;  %v134_v19 = vld [vmem:[#allocation2 + $0x10] sm:$0xff]  ;;  %v357_v20 = vpack.c.bf16 %v132_v18, %v132_v18  ;;  %v250_v12 = vunpack.c.0.s8 %v246_v8 }
  0x8a   :  { %94 = vst.msk [vmem:[#allocation2 + $0x18] sm:$0xff] %vm32_vm0, %v88_v13  ;;  %v359_v22 = vpack.c.bf16 %v134_v19, %v134_v19 }
  0x8b   :  { %v112_v16 = vsel %vm32_vm0, %v102_v15, 0.0  ;;  %v106_v17 = vsel %vm32_vm0, %v100_v14, 0.0  ;;  %v368_v26 = vunpack.c.l.b16 %v357_v20  ;;  %vm254_vm14 = vcmp.ne.s32.totalorder %v250_v12, 0  ;;  %v259_v20 = vld [vmem:[#allocation4] sm:$0xff] }
  0x8c   :  { %113 = vadd.xlane.f32.xlu1 %v112_v16  ;;  %107 = vadd.xlane.f32.xlu0 %v106_v17  ;;  %v396_v28 = vunpack.c.l.b16 %v359_v22 }
  0x90   :  { %v133_v21 = vld [vmem:[#allocation2 + $0x8] sm:$0xff] }
  0x91   :  { %532 = vmatpush.xpose.msk.msrb.mxu0 %vm32_vm0, %v133_v21  ;;  %v135_v23 = vld [vmem:[#allocation2 + $0x18] sm:$0xff]  ;;  %v358_v24 = vpack.c.bf16 %v133_v21, %v133_v21 }
  0x92   :  { %535 = vmatpush.xpose.msk.msrb.mxu1 %vm32_vm0, %v135_v23  ;;  %v360_v25 = vpack.c.bf16 %v135_v23, %v135_v23 }
  0x93   :  { %v369_v27 = vunpack.c.l.b16 %v358_v24  ;;  %v260_v24 = vld [vmem:[#allocation4 + $0x8] sm:$0xff] }
  0x94   :  { %v397_v29 = vunpack.c.l.b16 %v360_v25 }
  0x95   :  { %533 = vmatpush.xpose.msk.msrb.mxu0 %vm32_vm0, %v132_v18  ;;  %v370_v30 = vpack.c.b16 %v369_v27, %v368_v26 }
  0x96   :  { %536 = vmatpush.xpose.msk.msrb.mxu1 %vm32_vm0, %v134_v19  ;;  %v398_v32 = vpack.c.b16 %v397_v29, %v396_v28  ;;  %v585_v19 = vmov 0.0   ;;  %v261_v28 = vld [vmem:[#allocation4 + $0x10] sm:$0xff] }
  0x97   :  { %382 = vmatpush.bf16.msra.mxu2 %v370_v30  ;;  %124 = vst.msk [vmem:[#allocation5] sm:$0xff] %vm115_vm1, %v585_v19 }
  0x98   :  { %410 = vmatpush.bf16.msra.mxu3 %v398_v32  ;;  %534 = vmatmul.msk.f32.vlgmr.msrb.gmra.mxu0 %vm32_vm0, %v136_v31  ;;  %125 = vst.msk [vmem:[#allocation5 + $0x8] sm:$0xff] %vm115_vm1, %v585_v19  ;;  %v262_v32 = vld [vmem:[#allocation4 + $0x18] sm:$0xff] }
  0x99   :  { %537 = vmatmul.msk.f32.vlgmr.msrb.gmra.mxu1 %vm32_vm0, %v136_v31  ;;  %126 = vst.msk [vmem:[#allocation5 + $0x10] sm:$0xff] %vm115_vm1, %v585_v19 }
  0x9a   :  { %127 = vst.msk [vmem:[#allocation5 + $0x18] sm:$0xff] %vm115_vm1, %v585_v19 }
  0x9b   :  { %128 = vst.msk [vmem:[#allocation6] sm:$0xff] %vm32_vm0, %v585_v19 }
  0x9c   :  { %129 = vst.msk [vmem:[#allocation6 + $0x8] sm:$0xff] %vm32_vm0, %v585_v19 }
  0x9d   :  { %130 = vst.msk [vmem:[#allocation6 + $0x10] sm:$0xff] %vm32_vm0, %v585_v19 }
  0x9e   :  { %131 = vst.msk [vmem:[#allocation6 + $0x18] sm:$0xff] %vm32_vm0, %v585_v19 }
  0xf7   :  { %v111_v34 = vpop.xlane.xlu1 %110  ;;  %v105_v35 = vpop.xlane.xlu0 %104 }
  0xf8   :  { %118 = vst.msk [vmem:[#allocation3 + $0x10] sm:$0xff] %vm115_vm1, %v111_v34 }
  0xf9   :  { %116 = vst.msk [vmem:[#allocation3] sm:$0xff] %vm115_vm1, %v105_v35 }
  0xff   :  { %v114_v36 = vpop.xlane.xlu1 %113  ;;  %v108_v37 = vpop.xlane.xlu0 %107  ;;  %v195_v38 = vld [vmem:[#allocation3 + $0x10] sm:$0xff] }
 0x100   :  { %119 = vst.msk [vmem:[#allocation3 + $0x18] sm:$0xff] %vm115_vm1, %v114_v36  ;;  %v193_v39 = vld [vmem:[#allocation3] sm:$0xff]  ;;  %209 = vperm.xlu0 %548, %v195_v38  }
 0x101   :  { %117 = vst.msk [vmem:[#allocation3 + $0x8] sm:$0xff] %vm115_vm1, %v108_v37  ;;  %199 = vperm.xlu2 %547, %v193_v39  }
 0x107   :  { %v196_v40 = vld [vmem:[#allocation3 + $0x18] sm:$0xff] }
 0x108   :  { %214 = vperm.xlu1 %549, %v196_v40   ;;  %v194_v41 = vld [vmem:[#allocation3 + $0x8] sm:$0xff] }
 0x109   :  { %204 = vperm.xlu2 %547, %v194_v41  }
 0x115   :  { %v164_v43 = vpop.f32.mrf.mxu0 }
 0x116   :  { %v217_v45 = vperm.slane %v164_v43, 0  ;;  %v190_v0 = vpop.f32.mrf.mxu1 }
 0x117   :  { %v218_v2 = vperm.slane %v190_v0, 0 }
 0x15b   :  { %v200_v48 = vpop.permute.xlu2 %199 }
 0x15c   :  { %v219_v49 = vadd.f32 %v217_v45, %v200_v48 }
 0x15e   :  { %v227_v50 = vmul.f32 0.2, %v219_v49  ;;  %vm223_vm4 = vcmp.gt.f32.partialorder %v219_v49, 0.0 }
 0x160   :  { %v231_v52 = vsel %vm223_vm4, %v219_v49, %v227_v50 }
 0x161   :  { %v670_v53 = vsel %vm251_vm5, %v231_v52, -9e+15 }
 0x162   :  { %v264_v54 = vsel %vm263_vm6, %v670_v53, -inf }
 0x163   :  { %v205_v56 = vpop.permute.xlu2 %204  ;;  %265 = vmax.xlane.f32.xlu2 %v264_v54 }
 0x164   :  { %v220_v58 = vadd.f32 %v217_v45, %v205_v56 }
 0x166   :  { %v228_v59 = vmul.f32 0.2, %v220_v58  ;;  %vm224_vm7 = vcmp.gt.f32.partialorder %v220_v58, 0.0 }
 0x168   :  { %v232_v60 = vsel %vm224_vm7, %v220_v58, %v228_v59 }
 0x169   :  { %v681_v62 = vsel %vm252_vm8, %v232_v60, -9e+15 }
 0x16a   :  { %v267_v63 = vsel %vm263_vm6, %v681_v62, -inf }
 0x16b   :  { %268 = vmax.xlane.f32.xlu1 %v267_v63 }
 0x172   :  { %v210_v5 = vpop.permute.xlu0 %209 }
 0x173   :  { %v221_v6 = vadd.f32 %v218_v2, %v210_v5 }
 0x175   :  { %v229_v7 = vmul.f32 0.2, %v221_v6  ;;  %vm225_vm11 = vcmp.gt.f32.partialorder %v221_v6, 0.0 }
 0x177   :  { %v233_v9 = vsel %vm225_vm11, %v221_v6, %v229_v7 }
 0x178   :  { %v257_v10 = vsel %vm253_vm12, %v233_v9, -9e+15 }
 0x179   :  { %v270_v11 = vsel %vm263_vm6, %v257_v10, -inf }
 0x17a   :  { %v215_v13 = vpop.permute.xlu1 %214  ;;  %271 = vmax.xlane.f32.xlu0 %v270_v11 }
 0x17b   :  { %v222_v14 = vadd.f32 %v218_v2, %v215_v13 }
 0x17d   :  { %v230_v15 = vmul.f32 0.2, %v222_v14  ;;  %vm226_vm13 = vcmp.gt.f32.partialorder %v222_v14, 0.0 }
 0x17f   :  { %v234_v16 = vsel %vm226_vm13, %v222_v14, %v230_v15 }
 0x180   :  { %v258_v17 = vsel %vm254_vm14, %v234_v16, -9e+15  ;;  %v326_v16 = vld [vmem:[#allocation5 + $0x10] sm:$0xff] }
 0x181   :  { %v273_v18 = vsel %vm263_vm6, %v258_v17, -inf }
 0x182   :  { %274 = vmax.xlane.f32.xlu2 %v273_v18 }
 0x1d6   :  { %v266_v21 = vpop.xlane.xlu2 %265 }
 0x1d7   :  { %v276_v22 = vmax.f32 %v259_v20, %v266_v21  ;;  %v325_v21 = vld [vmem:[#allocation5 + $0x8] sm:$0xff] }
 0x1d9   :  { %v280_v23 = vsub.f32 %v259_v20, %v276_v22  ;;  %453 = vst.msk [vmem:[#allocation4] sm:$0xff] %vm115_vm1, %v276_v22  ;;  %294 = vperm.xlu2 %547, %v276_v22   ;;  %v327_v20 = vld [vmem:[#allocation5 + $0x18] sm:$0xff] }
 0x1db   :  { %v284_v60 = vmul.f32 1.442695, %v280_v23 }
 0x1de   :  { %v269_v25 = vpop.xlane.xlu1 %268 }
 0x1df   :  { %v277_v26 = vmax.f32 %v260_v24, %v269_v25 }
 0x1e1   :  { %v281_v27 = vsub.f32 %v260_v24, %v277_v26  ;;  %454 = vst.msk [vmem:[#allocation4 + $0x8] sm:$0xff] %vm115_vm1, %v277_v26  ;;  %299 = vperm.xlu1 %549, %v277_v26  }
 0x1e3   :  { %v286_v3 = vmul.f32 1.442695, %v281_v27 }
 0x1ed   :  { %v272_v29 = vpop.xlane.xlu0 %271 }
 0x1ee   :  { %v278_v30 = vmax.f32 %v261_v28, %v272_v29 }
 0x1f0   :  { %v282_v31 = vsub.f32 %v261_v28, %v278_v30  ;;  %455 = vst.msk [vmem:[#allocation4 + $0x10] sm:$0xff] %vm115_vm1, %v278_v30  ;;  %304 = vperm.xlu2 %547, %v278_v30  }
 0x1f2   :  { %v288_v6 = vmul.f32 1.442695, %v282_v31 }
 0x1f5   :  { %v275_v33 = vpop.xlane.xlu2 %274 }
 0x1f6   :  { %v279_v34 = vmax.f32 %v262_v32, %v275_v33 }
 0x1f8   :  { %v283_v35 = vsub.f32 %v262_v32, %v279_v34  ;;  %456 = vst.msk [vmem:[#allocation4 + $0x18] sm:$0xff] %vm115_vm1, %v279_v34  ;;  %309 = vperm.xlu2 %547, %v279_v34  }
 0x1fa   :  { %v290_v5 = vmul.f32 1.442695, %v283_v35  ;;  %v417_v35 = vld [vmem:[#allocation6] sm:$0xff] }
 0x233   :  { %v295_v36 = vpop.permute.xlu2 %294 }
 0x234   :  { %v312_v37 = vsub.f32 %v670_v53, %v295_v36 }
 0x236   :  { %v316_v38 = vmul.f32 1.442695, %v312_v37 }
 0x238   :  { %551 = vpow2.f32 %v316_v38 }
 0x23e   :  { %v552_v39 = vpop.eup %551 }
 0x23f   :  { %v332_v40 = vsel %vm263_vm6, %v552_v39, 0.0  ;;  %v353_v54 = vpack.c.bf16 %v552_v39, %v552_v39 }
 0x240   :  { %333 = vadd.xlane.f32.xlu0 %v332_v40 }
 0x241   :  { %v363_v63 = vunpack.c.l.b16 %v353_v54 }
 0x24a   :  { %v305_v41 = vpop.permute.xlu2 %304 }
 0x24b   :  { %v314_v42 = vsub.f32 %v257_v10, %v305_v41  ;;  %v324_v10 = vld [vmem:[#allocation5] sm:$0xff]  ;;  %v420_v41 = vld [vmem:[#allocation6 + $0x18] sm:$0xff] }
 0x24d   :  { %v320_v43 = vmul.f32 1.442695, %v314_v42 }
 0x24f   :  { %553 = vpow2.f32 %v320_v43  ;;  %v419_v43 = vld [vmem:[#allocation6 + $0x10] sm:$0xff] }
 0x252   :  { %v310_v44 = vpop.permute.xlu2 %309 }
 0x253   :  { %v300_v45 = vpop.permute.xlu1 %299  ;;  %v315_v46 = vsub.f32 %v258_v17, %v310_v44  ;;  %v418_v44 = vld [vmem:[#allocation6 + $0x8] sm:$0xff] }
 0x254   :  { %v313_v47 = vsub.f32 %v681_v62, %v300_v45 }
 0x255   :  { %v554_v48 = vpop.eup %553  ;;  %v322_v49 = vmul.f32 1.442695, %v315_v46 }
 0x256   :  { %v318_v50 = vmul.f32 1.442695, %v313_v47  ;;  %v338_v51 = vsel %vm263_vm6, %v554_v48, 0.0  ;;  %v355_v52 = vpack.c.bf16 %v554_v48, %v554_v48 }
 0x257   :  { %555 = vpow2.f32 %v322_v49  ;;  %339 = vadd.xlane.f32.xlu0 %v338_v51 }
 0x258   :  { %557 = vpow2.f32 %v318_v50  ;;  %v391_v61 = vunpack.c.l.b16 %v355_v52 }
 0x259   :  { %559 = vpow2.f32 %v284_v60 }
 0x25a   :  { %561 = vpow2.f32 %v286_v3 }
 0x25b   :  { %563 = vpow2.f32 %v290_v5 }
 0x25c   :  { %565 = vpow2.f32 %v288_v6 }
 0x25d   :  { %v556_v53 = vpop.eup %555 }
 0x25e   :  { %v558_v55 = vpop.eup %557  ;;  %v341_v56 = vsel %vm263_vm6, %v556_v53, 0.0  ;;  %v356_v57 = vpack.c.bf16 %v556_v53, %v556_v53 }
 0x25f   :  { %v335_v58 = vsel %vm263_vm6, %v558_v55, 0.0  ;;  %342 = vadd.xlane.f32.xlu1 %v341_v56  ;;  %v354_v59 = vpack.c.bf16 %v558_v55, %v558_v55  ;;  %v560_v4 = vpop.eup %559 }
 0x260   :  { %336 = vadd.xlane.f32.xlu2 %v335_v58  ;;  %v392_v62 = vunpack.c.l.b16 %v356_v57  ;;  %v562_v7 = vpop.eup %561  ;;  %v328_v11 = vmul.f32 %v560_v4, %v324_v10 }
 0x261   :  { %v364_v0 = vunpack.c.l.b16 %v354_v59  ;;  %v564_v8 = vpop.eup %563  ;;  %v329_v24 = vmul.f32 %v562_v7, %v325_v21 }
 0x262   :  { %v393_v1 = vpack.c.b16 %v392_v62, %v391_v61  ;;  %v566_v9 = vpop.eup %565  ;;  %v331_v22 = vmul.f32 %v564_v8, %v327_v20 }
 0x263   :  { %v365_v2 = vpack.c.b16 %v364_v0, %v363_v63  ;;  %v330_v17 = vmul.f32 %v566_v9, %v326_v16 }
 0x264   :  { %539 = vmatmul.msk.bf16.vlgmr.msra.gmra.mxu3 %vm263_vm6, %v393_v1 }
 0x265   :  { %538 = vmatmul.msk.bf16.vlgmr.msra.gmra.mxu2 %vm263_vm6, %v365_v2 }
 0x26b   :  { %423 = vperm.xlu0 %548, %v560_v4  }
 0x273   :  { %428 = vperm.xlu0 %548, %v562_v7  }
 0x278   :  { %438 = vperm.xlu2 %547, %v564_v8  }
 0x27b   :  { %433 = vperm.xlu0 %548, %v566_v9  }
 0x2b3   :  { %v334_v12 = vpop.xlane.xlu0 %333 }
 0x2b4   :  { %v344_v13 = vadd.f32 %v334_v12, %v328_v11 }
 0x2b6   :  { %349 = vst.msk [vmem:[#allocation5] sm:$0xff] %vm115_vm1, %v344_v13 }
 0x2bd   :  { %v460_v14 = vld [vmem:[#allocation5] sm:$0xff] }
 0x2be   :  { %567 = vrcp.f32 %v460_v14 }
 0x2c4   :  { %v568_v15 = vpop.eup %567 }
 0x2c5   :  { %474 = vperm.xlu0 %548, %v568_v15  }
 0x2ca   :  { %v340_v18 = vpop.xlane.xlu0 %339 }
 0x2cb   :  { %v346_v19 = vadd.f32 %v340_v18, %v330_v17 }
 0x2cd   :  { %351 = vst.msk [vmem:[#allocation5 + $0x10] sm:$0xff] %vm115_vm1, %v346_v19 }
 0x2d2   :  { %v343_v23 = vpop.xlane.xlu1 %342 }
 0x2d3   :  { %v347_v25 = vadd.f32 %v343_v23, %v331_v22  ;;  %v337_v26 = vpop.xlane.xlu2 %336 }
 0x2d4   :  { %v345_v27 = vadd.f32 %v337_v26, %v329_v24  ;;  %v462_v28 = vld [vmem:[#allocation5 + $0x10] sm:$0xff] }
 0x2d5   :  { %352 = vst.msk [vmem:[#allocation5 + $0x18] sm:$0xff] %vm115_vm1, %v347_v25  ;;  %569 = vrcp.f32 %v462_v28 }
 0x2d6   :  { %350 = vst.msk [vmem:[#allocation5 + $0x8] sm:$0xff] %vm115_vm1, %v345_v27 }
 0x2db   :  { %v570_v29 = vpop.eup %569  ;;  %v439_v42 = vpop.permute.xlu2 %438 }
 0x2dc   :  { %484 = vperm.xlu0 %548, %v570_v29   ;;  %v463_v30 = vld [vmem:[#allocation5 + $0x18] sm:$0xff]  ;;  %v444_v46 = vmul.f32 %v439_v42, %v420_v41 }
 0x2dd   :  { %v424_v31 = vpop.permute.xlu0 %423  ;;  %571 = vrcp.f32 %v463_v30  ;;  %v461_v32 = vld [vmem:[#allocation5 + $0x8] sm:$0xff] }
 0x2de   :  { %573 = vrcp.f32 %v461_v32  ;;  %v441_v37 = vmul.f32 %v424_v31, %v417_v35 }
 0x2e3   :  { %v572_v33 = vpop.eup %571 }
 0x2e4   :  { %v574_v34 = vpop.eup %573  ;;  %489 = vperm.xlu0 %548, %v572_v33  }
 0x2e5   :  { %479 = vperm.xlu1 %549, %v574_v34   ;;  %v429_v36 = vpop.permute.xlu0 %428 }
 0x2e6   :  { %v442_v48 = vmul.f32 %v429_v36, %v418_v44 }
 0x2e7   :  { %v412_v38 = vpop.f32.mrf.mxu3 }
 0x2e8   :  { %v384_v39 = vpop.f32.mrf.mxu2 }
 0x2e9   :  { %v445_v40 = vadd.f32 %v441_v37, %v384_v39 }
 0x2eb   :  { %449 = vst.msk [vmem:[#allocation6] sm:$0xff] %vm32_vm0, %v445_v40 }
 0x2ed   :  { %v434_v45 = vpop.permute.xlu0 %433 }
 0x2ee   :  { %v443_v47 = vmul.f32 %v434_v45, %v419_v43 }
 0x2ef   :  { %v414_v49 = vpop.f32.mrf.mxu3 }
 0x2f0   :  { %v447_v50 = vadd.f32 %v443_v47, %v412_v38  ;;  %v386_v51 = vpop.f32.mrf.mxu2  ;;  %v448_v52 = vadd.f32 %v444_v46, %v414_v49 }
 0x2f1   :  { %v446_v53 = vadd.f32 %v442_v48, %v386_v51 }
 0x2f2   :  { %451 = vst.msk [vmem:[#allocation6 + $0x10] sm:$0xff] %vm32_vm0, %v447_v50  ;;  %v468_v54 = vld [vmem:[#allocation6] sm:$0xff] }
 0x2f3   :  { %450 = vst.msk [vmem:[#allocation6 + $0x8] sm:$0xff] %vm32_vm0, %v446_v53 }
 0x2f4   :  { %452 = vst.msk [vmem:[#allocation6 + $0x18] sm:$0xff] %vm32_vm0, %v448_v52 }
 0x2f9   :  { %v470_v63 = vld [vmem:[#allocation6 + $0x10] sm:$0xff] }
 0x2fa   :  { %v469_v6 = vld [vmem:[#allocation6 + $0x8] sm:$0xff] }
 0x2fb   :  { %v471_v4 = vld [vmem:[#allocation6 + $0x18] sm:$0xff] }
 0x337   :  { %v475_v55 = vpop.permute.xlu0 %474 }
 0x338   :  { %v492_v56 = vmul.f32 %v475_v55, %v468_v54 }
 0x33a   :  { %v496_v57 = vmin.f32 %v492_v56, 0.0  ;;  %vm512_vm15 = vcmp.gt.f32.partialorder %v492_v56, 0.0 }
 0x33c   :  { %v500_v58 = vmul.f32 1.442695, %v496_v57 }
 0x33e   :  { %575 = vpow2.f32 %v500_v58 }
 0x344   :  { %v576_v59 = vpop.eup %575 }
 0x345   :  { %v540_v60 = vadd.f32 -1.0, %v576_v59 }
 0x347   :  { %v516_v61 = vsel %vm512_vm15, %v492_v56, %v540_v60 }
 0x348   :  { %520 = vst.msk [vmem:[%s741_s5] sm:$0xff] %vm32_vm0, %v516_v61 }
 0x34e   :  { %v485_v62 = vpop.permute.xlu0 %484 }
 0x34f   :  { %v494_v0 = vmul.f32 %v485_v62, %v470_v63 }
 0x351   :  { %v498_v1 = vmin.f32 %v494_v0, 0.0  ;;  %vm514_vm1 = vcmp.gt.f32.partialorder %v494_v0, 0.0 }
 0x353   :  { %v504_v2 = vmul.f32 1.442695, %v498_v1 }
 0x355   :  { %577 = vpow2.f32 %v504_v2 }
 0x356   :  { %v490_v3 = vpop.permute.xlu0 %489 }
 0x357   :  { %v495_v5 = vmul.f32 %v490_v3, %v471_v4  ;;  %v480_v7 = vpop.permute.xlu1 %479 }
 0x358   :  { %v493_v8 = vmul.f32 %v480_v7, %v469_v6 }
 0x359   :  { %v499_v9 = vmin.f32 %v495_v5, 0.0  ;;  %vm515_vm2 = vcmp.gt.f32.partialorder %v495_v5, 0.0 }
 0x35a   :  { %v497_v10 = vmin.f32 %v493_v8, 0.0  ;;  %vm513_vm3 = vcmp.gt.f32.partialorder %v493_v8, 0.0 }
 0x35b   :  { %v578_v11 = vpop.eup %577  ;;  %v506_v12 = vmul.f32 1.442695, %v499_v9 }
 0x35c   :  { %v542_v13 = vadd.f32 -1.0, %v578_v11  ;;  %v502_v14 = vmul.f32 1.442695, %v497_v10 }
 0x35d   :  { %579 = vpow2.f32 %v506_v12 }
 0x35e   :  { %v518_v15 = vsel %vm514_vm1, %v494_v0, %v542_v13  ;;  %581 = vpow2.f32 %v502_v14 }
 0x35f   :  { %522 = vst.msk [vmem:[%s741_s5 + $0x10] sm:$0xff] %vm32_vm0, %v518_v15 }
 0x363   :  { %v580_v16 = vpop.eup %579 }
 0x364   :  { %v582_v17 = vpop.eup %581  ;;  %v543_v18 = vadd.f32 -1.0, %v580_v16 }
 0x365   :  { %v541_v19 = vadd.f32 -1.0, %v582_v17 }
 0x366   :  { %v519_v20 = vsel %vm515_vm2, %v495_v5, %v543_v18 }
 0x367   :  { %523 = vst.msk [vmem:[%s741_s5 + $0x18] sm:$0xff] %vm32_vm0, %v519_v20  ;;  %v517_v21 = vsel %vm513_vm3, %v493_v8, %v541_v19 }
 0x368   :  { %521 = vst.msk [vmem:[%s741_s5 + $0x8] sm:$0xff] %vm32_vm0, %v517_v21 }

</bundles_post_ra>
